<compile_context>
chip_gen: v5e
topology: v5e:2x2
jax: 0.10.0
libtpu: 0.0.40
codegen_flags: <defaults>
</compile_context>

<pallas_src>
import functools

import jax
import jax.numpy as jnp
from jax.experimental import pallas as pl
from jax.experimental.pallas import tpu as pltpu


def _round_up(x: int, m: int) -> int:
    return ((x + m - 1) // m) * m


def _sublane(itemsize: int) -> int:
    # sublane packing: 8 rows per vreg for 4-byte, 16 for 2-byte, 32 for 1-byte
    return {4: 8, 2: 16, 1: 32}.get(itemsize, 8)


# Aim for ~8 grid steps so v7x's two TensorCores each get >= 2 pipelined
# (double-buffered) steps; v5e/v6e also benefit from shorter exposed
# first/last-block DMAs.
_TARGET_STEPS = 8
# Never shrink a block below ~4 MiB of streamed input just to add more steps.
_MIN_BLOCK_BYTES = 4 * 1024 * 1024


def _vmem_budgets():
    """Per-generation (tile_budget_bytes, vmem_limit_bytes)."""
    try:
        cap = pltpu.get_tpu_info().vmem_capacity_bytes
    except Exception:
        cap = 64 * 1024 * 1024  # conservative fallback (v7x per-TC size)
    if cap >= 100 * 1024 * 1024:
        # v5e / v6e: 128 MiB physical VMEM per TensorCore.
        return 64 * 1024 * 1024, 96 * 1024 * 1024
    # v7x: 64 MiB physical per TensorCore; keep real usage well under the limit.
    return 28 * 1024 * 1024, 48 * 1024 * 1024


def _auto_block_rows(rows: int, features: int, itemsize: int,
                     tile_budget: int) -> int:
    sublane = _sublane(itemsize)
    if rows <= sublane:
        # Block equals the full row extent (always a legal block shape).
        return rows
    # Per row: 2 (in+out) * 2 (double-buffer) * itemsize streaming bytes,
    # plus ~4 f32 temporaries live inside the kernel body (upcast x, centered,
    # pre-cast result, slack for Mosaic staging).
    bytes_per_row = features * (4 * itemsize + 16)
    br = tile_budget // max(bytes_per_row, 1)

    # Prefer ~_TARGET_STEPS grid steps, but keep each input block >= ~4 MiB.
    rows_for_target_steps = _round_up(pl.cdiv(rows, _TARGET_STEPS), sublane)
    min_rows_by_bytes = _round_up(
        max(_MIN_BLOCK_BYTES // max(features * itemsize, 1), 1), sublane)
    br = min(br, max(rows_for_target_steps, min_rows_by_bytes))

    # Never larger than the (sublane-rounded) input itself.
    br = min(br, _round_up(rows, sublane))
    br = max(sublane, (br // sublane) * sublane)
    return br


def _layernorm_kernel(x_ref, alpha_ref, bias_ref, o_ref, *, eps: float,
                      features: int):
    """Row-wise LayerNorm matching the PyTorch reference.

    x_ref:     (block_rows, features)  VMEM tile of flattened [batch*seq, features]
    alpha_ref: (1, features)           learnable scale
    bias_ref:  (1, features)           learnable bias
    o_ref:     (block_rows, features)  output tile
    """
    x = x_ref[...].astype(jnp.float32)

    # Centered two-pass variance: the extra VPU multiply + XLU reduce runs in
    # slack under the HBM stream and avoids E[x^2]-E[x]^2 cancellation.
    mean = jnp.sum(x, axis=-1, keepdims=True) * jnp.float32(1.0 / features)
    centered = x - mean
    var = jnp.sum(centered * centered, axis=-1, keepdims=True) * jnp.float32(
        1.0 / (features - 1))
    std = jnp.sqrt(var)

    # Per-row reciprocal (block_rows values) instead of a per-element divide.
    inv = pl.reciprocal(std + jnp.float32(eps), approx=False)

    alpha = alpha_ref[...].astype(jnp.float32)   # (1, F) broadcasts over rows
    bias = bias_ref[...].astype(jnp.float32)

    # Single fused expression -> exactly one output store stream.
    o_ref[...] = (centered * inv * alpha + bias).astype(o_ref.dtype)


def layer_normalization(x_2d, alpha, bias, *, eps=1e-6, block_rows=None):
    """Apply the Pallas layer-norm kernel over a [rows, features] array."""
    rows, features = x_2d.shape
    assert features > 1, "unbiased std requires features > 1"

    itemsize = jnp.dtype(x_2d.dtype).itemsize
    tile_budget, vmem_limit_bytes = _vmem_budgets()

    if block_rows is None:
        block_rows = _auto_block_rows(rows, features, itemsize, tile_budget)
    block_rows = max(1, min(block_rows, rows))

    alpha_2d = alpha.reshape(1, features)
    bias_2d = bias.reshape(1, features)

    kernel = functools.partial(_layernorm_kernel, eps=eps, features=features)

    # Advisory cost hint so XLA overlaps surrounding ops with this
    # memory-bound custom call.
    bytes_accessed = 2 * rows * features * itemsize + 2 * features * 4
    cost = pl.CostEstimate(
        flops=8 * rows * features,
        transcendentals=2 * rows,          # sqrt + reciprocal per row
        bytes_accessed=bytes_accessed,
    )

    # No padding / output slicing: ragged last block is handled by Pallas
    # (rows are independent; out-of-range rows of the boundary block are
    # simply not written back).
    grid = (pl.cdiv(rows, block_rows),)

    out = pl.pallas_call(
        kernel,
        out_shape=jax.ShapeDtypeStruct((rows, features), x_2d.dtype),
        grid_spec=pltpu.PrefetchScalarGridSpec(
            num_scalar_prefetch=0,
            grid=grid,
            in_specs=[
                pl.BlockSpec((block_rows, features), lambda i: (i, 0)),
                pl.BlockSpec((1, features), lambda i: (0, 0)),
                pl.BlockSpec((1, features), lambda i: (0, 0)),
            ],
            out_specs=pl.BlockSpec((block_rows, features), lambda i: (i, 0)),
        ),
        compiler_params=pltpu.CompilerParams(
            dimension_semantics=("parallel",),
            vmem_limit_bytes=vmem_limit_bytes,
        ),
        cost_estimate=cost,
    )(x_2d, alpha_2d, bias_2d)

    return out


class Encoder:
    """JAX/Pallas port of the PyTorch Encoder module.

    layers: list of callables `layer(x, mask) -> x` (the EncoderBlocks).  The
    reference code does not define EncoderBlock, so the default is an empty
    list; the final LayerNormalization runs in the Pallas TPU kernel above.
    """

    def __init__(self, features: int, layers=None, eps: float = 1e-6):
        self.features = features
        self.layers = list(layers) if layers is not None else []
        self.eps = eps
        # deterministic parameter init matching nn.Parameter(torch.ones/zeros)
        self.alpha = jnp.ones((features,), dtype=jnp.float32)
        self.bias = jnp.zeros((features,), dtype=jnp.float32)

    def __call__(self, x, mask):
        # x: [batch, seq, features]
        for layer in self.layers:
            x = layer(x, mask)
        b, s, f = x.shape
        x_2d = x.reshape(b * s, f)
        y_2d = layer_normalization(x_2d, self.alpha, self.bias, eps=self.eps)
        return y_2d.reshape(b, s, f)


if __name__ == "__main__":
    # SMALL shapes: batch=2, seq=8, features=128 (lane-dense: F % 128 == 0)
    batch, seq, features = 2, 8, 128

    key = jax.random.PRNGKey(0)
    kx, km = jax.random.split(key)
    x = jax.random.normal(kx, (batch, seq, features), dtype=jnp.float32)
    # mask is passed through to layers (unused by the empty default layer list)
    mask = jnp.ones((batch, 1, 1, seq), dtype=jnp.float32)

    # TODO(synk): EncoderBlock (self-attention / feed-forward) is not defined
    # in the reference source; the `layers` list is left empty / user-supplied.
    enc = Encoder(features, layers=[])

    out = enc(x, mask)
    out = jax.block_until_ready(out)

    # sanity check against a pure-JAX reference of the torch math
    mean = jnp.mean(x, axis=-1, keepdims=True)
    centered = x - mean
    var = jnp.sum(centered * centered, axis=-1, keepdims=True) / (features - 1)
    std = jnp.sqrt(var)
    ref = (enc.alpha.reshape(1, 1, features) * centered / (std + 1e-6)
           + enc.bias.reshape(1, 1, features))
    assert jnp.allclose(out, ref, atol=1e-5, rtol=1e-5), "mismatch vs reference"

    print("KERNEL_OK")
</pallas_src>

<mosaic_0001>
module attributes {stable_mosaic.version = 11 : i64} {
  func.func @_layernorm_kernel(%arg0: i32, %arg1: memref<16x128xf32, #tpu.memory_space<vmem>>, %arg2: memref<1x128xf32, #tpu.memory_space<vmem>>, %arg3: memref<1x128xf32, #tpu.memory_space<vmem>>, %arg4: memref<16x128xf32, #tpu.memory_space<vmem>>) attributes {dimension_semantics = [#tpu.dimension_semantics<parallel>], iteration_bounds = array<i64: 1>, scalar_prefetch = 0 : i64, scratch_operands = 0 : i64, tpu.core_type = #tpu.core_type<tc>, window_params = [{transform_indices = @transform_0, window_bounds = array<i64: 16, 128>}, {pipeline_mode = #tpu.pipeline_mode<synchronous>, transform_indices = @transform_1, window_bounds = array<i64: 1, 128>}, {pipeline_mode = #tpu.pipeline_mode<synchronous>, transform_indices = @transform_2, window_bounds = array<i64: 1, 128>}, {transform_indices = @transform_3, window_bounds = array<i64: 16, 128>}]} {
    %c0 = arith.constant 0 : index
    %c0_0 = arith.constant 0 : index
    %0 = vector.load %arg1[%c0, %c0_0] : memref<16x128xf32, #tpu.memory_space<vmem>>, vector<16x128xf32>
    %cst = arith.constant dense<0.000000e+00> : vector<16xf32>
    %1 = vector.multi_reduction <add>, %0, %cst [1] : vector<16x128xf32> to vector<16xf32>
    %2 = vector.shape_cast %1 : vector<16xf32> to vector<16x1xf32>
    %cst_1 = arith.constant 7.812500e-03 : f32
    %3 = vector.broadcast %cst_1 : f32 to vector<16x1xf32>
    %4 = arith.mulf %2, %3 : vector<16x1xf32>
    %5 = vector.broadcast %4 : vector<16x1xf32> to vector<16x128xf32>
    %6 = arith.subf %0, %5 : vector<16x128xf32>
    %7 = arith.mulf %6, %6 : vector<16x128xf32>
    %cst_2 = arith.constant dense<0.000000e+00> : vector<16xf32>
    %8 = vector.multi_reduction <add>, %7, %cst_2 [1] : vector<16x128xf32> to vector<16xf32>
    %9 = vector.shape_cast %8 : vector<16xf32> to vector<16x1xf32>
    %cst_3 = arith.constant 0.00787401571 : f32
    %10 = vector.broadcast %cst_3 : f32 to vector<16x1xf32>
    %11 = arith.mulf %9, %10 : vector<16x1xf32>
    %12 = math.sqrt %11 : vector<16x1xf32>
    %cst_4 = arith.constant 9.99999997E-7 : f32
    %13 = vector.broadcast %cst_4 : f32 to vector<16x1xf32>
    %14 = arith.addf %12, %13 : vector<16x1xf32>
    %15 = tpu.reciprocal %14 : vector<16x1xf32> -> vector<16x1xf32>
    %c0_5 = arith.constant 0 : index
    %c0_6 = arith.constant 0 : index
    %16 = vector.load %arg2[%c0_5, %c0_6] : memref<1x128xf32, #tpu.memory_space<vmem>>, vector<1x128xf32>
    %c0_7 = arith.constant 0 : index
    %c0_8 = arith.constant 0 : index
    %17 = vector.load %arg3[%c0_7, %c0_8] : memref<1x128xf32, #tpu.memory_space<vmem>>, vector<1x128xf32>
    %18 = vector.broadcast %15 : vector<16x1xf32> to vector<16x128xf32>
    %19 = arith.mulf %6, %18 : vector<16x128xf32>
    %20 = vector.broadcast %16 : vector<1x128xf32> to vector<16x128xf32>
    %21 = arith.mulf %19, %20 : vector<16x128xf32>
    %22 = vector.broadcast %17 : vector<1x128xf32> to vector<16x128xf32>
    %23 = arith.addf %21, %22 : vector<16x128xf32>
    %c0_9 = arith.constant 0 : index
    %c0_10 = arith.constant 0 : index
    %24 = vector.load %arg4[%c0_9, %c0_10] : memref<16x128xf32, #tpu.memory_space<vmem>>, vector<16x128xf32>
    tpu.vector_store %arg4[%c0_9, %c0_10], %23 {strides = array<i32>} : memref<16x128xf32, #tpu.memory_space<vmem>>, vector<16x128xf32>,
    return
  }
  func.func @transform_0(%arg0: i32) -> (i32, i32) {
    %c0_i32 = arith.constant 0 : i32
    %c0_i32_0 = arith.constant 0 : i32
    return %arg0, %c0_i32 : i32, i32
  }
  func.func @transform_1(%arg0: i32) -> (i32, i32) {
    %c0_i32 = arith.constant 0 : i32
    %c0_i32_0 = arith.constant 0 : i32
    %c0_i32_1 = arith.constant 0 : i32
    return %c0_i32, %c0_i32_0 : i32, i32
  }
  func.func @transform_2(%arg0: i32) -> (i32, i32) {
    %c0_i32 = arith.constant 0 : i32
    %c0_i32_0 = arith.constant 0 : i32
    %c0_i32_1 = arith.constant 0 : i32
    return %c0_i32, %c0_i32_0 : i32, i32
  }
  func.func @transform_3(%arg0: i32) -> (i32, i32) {
    %c0_i32 = arith.constant 0 : i32
    %c0_i32_0 = arith.constant 0 : i32
    return %arg0, %c0_i32 : i32, i32
  }
}

</mosaic_0001>

<bundles_post_ra>
// kernel: tpu_custom_call.1
= control target key start
LH: loop header
LB: loop body
LE: loop exit
PB: predicated region body
PF: predicated region fallthrough
CT: control target
= control target key end

     0   :  { %8 = vsyncpa [#allocation3], 0  ;;  %s294_s0 = inlined_call_operand.hbm [shape: f32[16,128], index: 0, kind: input, shape index: {}]   ;;  %s295_s1 = inlined_call_operand.hbm [shape: f32[1,128], index: 1, kind: input, shape index: {}]   ;;  %s296_s2 = inlined_call_operand.vmem [shape: f32[1,128], index: 2, kind: input, shape index: {}]   ;;  %s297_s3 = inlined_call_operand.hbm [shape: f32[16,128], index: 3, kind: output, shape index: {}]  }
   0x1   :  { %9 = vsyncpa [#allocation6], 0 }
   0x2   :  { %10 = vsyncpa [#allocation4], 0  ;;  %s15_s14 = sshll.u32 %s294_s0, 4  ;;  %s246_s15 = smov [#allocation2]   ;;  %s16_s14 = int_to_ptr.hbm [resolvable:$true] %s15_s14 }
   0x3   :  { %s17_s16 = sshll.u32 %s246_s15, 4  ;;  %s29_s19 = sshll.u32 %s295_s1, 4  ;;  %s18_s16 = int_to_ptr.vmem [resolvable:$true] %s17_s16  ;;  %s30_s19 = int_to_ptr.hbm [resolvable:$true] %s29_s19 }
   0x4   :  { %s247_s20 = smov 128   ;;  %s248_s21 = smov 8  }
   0x5   :  { %23 = dma.hbm_to_vmem [thread:$0]  %s16_s14, 256, %s18_s16, [#allocation3], %s247_s20, %s247_s20, %s248_s21  }
   0x6   :  { %s249_s22 = smov [#allocation5]  }
   0x7   :  { %s31_s23 = sshll.u32 %s249_s22, 4  ;;  %s32_s23 = int_to_ptr.vmem [resolvable:$true] %s31_s23 }
   0x8   :  { %34 = dma.hbm_to_vmem [thread:$0]  %s30_s19, 16, %s32_s23, [#allocation6]  }
   0x9   :  { %240 = dma.done.wait [#allocation3], 256  }
   0xa   :  { %241 = vsyncadd [#allocation3], 4294967040 }
   0xb   :  { %242 = dma.done.wait [#allocation6], 16  }
   0xc   :  { %243 = vsyncadd [#allocation6], 4294967280  ;;  %v45_v0 = vld [vmem:[#allocation2] sm:$0xff]  ;;  %v46_v1 = vld [vmem:[#allocation2 + $0x8] sm:$0xff]  ;;  %s250_s24 = smov [#allocation7]   ;;  %s139_s27 = sshll.u32 %s297_s3, 4  ;;  %s140_s27 = int_to_ptr.hbm [resolvable:$true] %s139_s27 }
   0xd   :  { %47 = vadd.xlane.f32.xlu0 %v45_v0  ;;  %v158_v47 = vld [vmem:[#allocation5] ss:$0 sm:$0xff]  ;;  %v159_v51 = vld [vmem:[%s296_s2] ss:$0 sm:$0xff]  ;;  %s137_s25 = sshll.u32 %s250_s24, 4  ;;  %s138_s25 = int_to_ptr.vmem [resolvable:$true] %s137_s25 }
  0x15   :  { %49 = vadd.xlane.f32.xlu0 %v46_v1 }
  0x80   :  { %v48_v2 = vpop.xlane.xlu0 %47 }
  0x81   :  { %v51_v3 = vmul.f32 0.0078125, %v48_v2 }
  0x83   :  { %v53_v4 = vsub.f32 %v45_v0, %v51_v3 }
  0x85   :  { %v55_v5 = vmul.f32 %v53_v4, %v53_v4 }
  0x87   :  { %57 = vadd.xlane.f32.xlu1 %v55_v5 }
  0x88   :  { %v50_v6 = vpop.xlane.xlu0 %49 }
  0x89   :  { %v52_v7 = vmul.f32 0.0078125, %v50_v6 }
  0x8b   :  { %v280_v8 = vsub.f32 %v46_v1, %v52_v7 }
  0x8d   :  { %v56_v9 = vmul.f32 %v280_v8, %v280_v8 }
  0x8f   :  { %59 = vadd.xlane.f32.xlu1 %v56_v9 }
  0xfa   :  { %v58_v10 = vpop.xlane.xlu1 %57 }
  0xfb   :  { %v61_v11 = vmul.f32 0.007874016, %v58_v10 }
  0xfd   :  { %160 = vrsqrt.f32 %v61_v11  ;;  %vm70_vm0 = vcmp.eq.f32.partialorder %v61_v11, inf  ;;  %v73_v24 = vand.u32 2147483648, %v61_v11  ;;  %vm72_vm1 = vcmp.eq.f32.partialorder %v61_v11, 0.0 }
 0x102   :  { %v60_v12 = vpop.xlane.xlu1 %59 }
 0x103   :  { %v161_v13 = vpop.eup %160  ;;  %v62_v14 = vmul.f32 0.007874016, %v60_v12 }
 0x104   :  { %v64_v15 = vmul.f32 %v161_v13, %v61_v11 }
 0x105   :  { %162 = vrsqrt.f32 %v62_v14  ;;  %vm82_vm2 = vcmp.eq.f32.partialorder %v62_v14, inf  ;;  %v85_v32 = vand.u32 2147483648, %v62_v14  ;;  %vm84_vm3 = vcmp.eq.f32.partialorder %v62_v14, 0.0 }
 0x106   :  { %v65_v16 = vmul.f32 %v161_v13, %v64_v15 }
 0x108   :  { %v66_v17 = vmul.f32 0.5, %v65_v16 }
 0x10a   :  { %v67_v18 = vsub.f32 1.5, %v66_v17 }
 0x10b   :  { %v163_v19 = vpop.eup %162 }
 0x10c   :  { %v68_v20 = vmul.f32 %v161_v13, %v67_v18  ;;  %v76_v21 = vmul.f32 %v163_v19, %v62_v14 }
 0x10e   :  { %v69_v22 = vmul.f32 %v68_v20, %v61_v11  ;;  %v77_v23 = vmul.f32 %v163_v19, %v76_v21 }
 0x110   :  { %v71_v25 = vsel %vm70_vm0, %v61_v11, %v69_v22  ;;  %v78_v26 = vmul.f32 0.5, %v77_v23 }
 0x111   :  { %v74_v27 = vsel %vm72_vm1, %v73_v24, %v71_v25 }
 0x112   :  { %v87_v28 = vadd.f32 1e-06, %v74_v27  ;;  %v79_v29 = vsub.f32 1.5, %v78_v26 }
 0x114   :  { %164 = vrcp.f32 %v87_v28  ;;  %v80_v30 = vmul.f32 %v163_v19, %v79_v29  ;;  %v100_v39 = vand.u32 2147483648, %v87_v28  ;;  %v98_v41 = vand.u32 2147483647, %v87_v28 }
 0x115   :  { %vm94_vm5 = vweird.f32 %v87_v28 }
 0x116   :  { %v81_v31 = vmul.f32 %v80_v30, %v62_v14  ;;  %v101_v44 = vor.u32 1.1754944e-38, %v100_v39  ;;  %vm99_vm7 = vcmp.eq.f32.partialorder %v98_v41, 8.507059e+37 }
 0x118   :  { %v83_v33 = vsel %vm82_vm2, %v62_v14, %v81_v31 }
 0x119   :  { %v86_v34 = vsel %vm84_vm3, %v85_v32, %v83_v33 }
 0x11a   :  { %v165_v35 = vpop.eup %164  ;;  %v88_v36 = vadd.f32 1e-06, %v86_v34 }
 0x11b   :  { %v90_v37 = vmul.f32 %v165_v35, %v87_v28  ;;  %vm95_vm4 = vweird.f32 %v165_v35 }
 0x11c   :  { %166 = vrcp.f32 %v88_v36  ;;  %vm96_vm6 = vmor %vm94_vm5, %vm95_vm4  ;;  %v114_v52 = vand.u32 2147483648, %v88_v36  ;;  %v112_v54 = vand.u32 2147483647, %v88_v36  ;;  %vm108_vm9 = vweird.f32 %v88_v36 }
 0x11d   :  { %v91_v38 = vsub.f32 1.0, %v90_v37 }
 0x11e   :  { %v115_v58 = vor.u32 1.1754944e-38, %v114_v52  ;;  %vm113_vm11 = vcmp.eq.f32.partialorder %v112_v54, 8.507059e+37 }
 0x11f   :  { %v92_v40 = vmul.f32 %v165_v35, %v91_v38 }
 0x121   :  { %v93_v42 = vadd.f32 %v165_v35, %v92_v40 }
 0x122   :  { %v167_v43 = vpop.eup %166 }
 0x123   :  { %v97_v45 = vsel %vm96_vm6, %v165_v35, %v93_v42  ;;  %v104_v46 = vmul.f32 %v167_v43, %v88_v36  ;;  %vm109_vm8 = vweird.f32 %v167_v43 }
 0x124   :  { %v102_v48 = vsel %vm99_vm7, %v101_v44, %v97_v45  ;;  %vm110_vm10 = vmor %vm108_vm9, %vm109_vm8 }
 0x125   :  { %v105_v49 = vsub.f32 1.0, %v104_v46  ;;  %v119_v50 = vmul.f32 %v102_v48, %v53_v4 }
 0x127   :  { %v106_v53 = vmul.f32 %v167_v43, %v105_v49  ;;  %v124_v55 = vmul.f32 %v158_v47, %v119_v50 }
 0x129   :  { %v107_v56 = vadd.f32 %v167_v43, %v106_v53  ;;  %v129_v57 = vadd.f32 %v159_v51, %v124_v55 }
 0x12b   :  { %v111_v59 = vsel %vm110_vm10, %v167_v43, %v107_v56  ;;  %131 = vst [vmem:[#allocation7] sm:$0xff] %v129_v57 }
 0x12c   :  { %v116_v60 = vsel %vm113_vm11, %v115_v58, %v111_v59 }
 0x12d   :  { %v120_v61 = vmul.f32 %v116_v60, %v280_v8 }
 0x12f   :  { %v125_v62 = vmul.f32 %v158_v47, %v120_v61 }
 0x131   :  { %v130_v63 = vadd.f32 %v159_v51, %v125_v62 }
 0x133   :  { %132 = vst [vmem:[#allocation7 + $0x8] sm:$0xff] %v130_v63 }
 0x134   :  { %145 = dma.vmem_to_hbm [thread:$0]  %s138_s25, 256, %s140_s27, [#allocation4], %s247_s20, %s247_s20, %s248_s21  }
 0x135   :  { %244 = dma.done.wait [#allocation4], 256  }
 0x136   :  { %245 = vsyncadd [#allocation4], 4294967040 }
 0x137   :  { %150 = vsyncpa [#allocation3], 1 }
 0x138   :  { %151 = vsyncpa [#allocation6], 1 }
 0x139   :  { %152 = vsyncpa [#allocation4], 1 }

</bundles_post_ra>
